<compile_context>
chip_gen: v5e
topology: v5e:2x2
jax: 0.10.0
libtpu: 0.0.40
codegen_flags: <defaults>
</compile_context>

<pallas_src>
import jax
import jax.numpy as jnp
from jax import lax
from jax.experimental import pallas as pl
from jax.experimental.pallas import tpu as pltpu

LANE = 128


def make_lstm_tagger_kernel(T, B, H, mm_dtype):
    """Build the kernel for static (T, B_padded, H). B must be a multiple of 8."""
    assert B % 8 == 0, "batch must be padded to a multiple of 8 sublanes"
    TB = T * B

    def kernel(sent_ref, embwih_ref, whh_ref, b_ref, wout_ref, bout_ref, out_ref):
        # sent_ref   : (T*B, 1)   int32  token ids, time-major flattened
        # embwih_ref : (V, 4H)    mm     fused  emb @ W_ih^T, gate order (i,f,o,g)
        # whh_ref    : (H, 4H)    mm     W_hh^T, gate order (i,f,o,g)
        # b_ref      : (1, 4H)    f32    b_ih + b_hh, gate order (i,f,o,g)
        # wout_ref   : (H, Cp)    mm     hidden2tag weight^T, lane-padded to 128
        # bout_ref   : (1, Cp)    f32    hidden2tag bias, pad columns = -1e30
        # out_ref    : (T*B, Cp)  f32    log-softmax tag scores (time-major)
        V = embwih_ref.shape[0]

        # --- Embedding + input projection fused: one-hot row-select of the
        # fused (V, 4H) table is a single MXU matmul for all timesteps. ---
        # TODO(synk): for non-toy vocabularies keep the fused table in HBM
        # (memory_space=pl.ANY) and gather rows with a scalar-prefetch DMA
        # (token ids in SMEM) instead of the one-hot matmul -- required to fit
        # v7x's 64 MiB VMEM and to overlap the fetch with the recurrence.
        tok = sent_ref[...]                                        # (T*B, 1) int32
        iota_v = lax.broadcasted_iota(jnp.int32, (TB, V), 1)       # (T*B, V)
        onehot = (tok == iota_v).astype(mm_dtype)
        gates_x = jnp.dot(onehot, embwih_ref[...],
                          preferred_element_type=jnp.float32) + b_ref[...]  # (T*B, 4H) f32

        whh = whh_ref[...]                                         # (H, 4H)

        h = jnp.zeros((B, H), jnp.float32)
        c = jnp.zeros((B, H), jnp.float32)
        hs = []

        # --- Serial recurrence: only the LSTM cell.  Fully unrolled (T static);
        # all slab offsets t*B are multiples of 8 sublanes -> aligned slices. ---
        # TODO(synk): hold whh in MXU weight registers across the unrolled loop
        # (pltpu.matmul_push_rhs once + matmul_acc_lhs/matmul_pop per step) to
        # drop the per-step RHS push from the serial critical path.
        for t in range(T):
            gates = gates_x[t * B:(t + 1) * B, :] + jnp.dot(
                h.astype(mm_dtype), whh, preferred_element_type=jnp.float32)  # (B, 4H)
            # gate order after host-side reorder: i, f, o, g
            sig = jax.nn.sigmoid(gates[:, 0:3 * H])                # one EUP launch
            i_g = sig[:, 0:H]
            f_g = sig[:, H:2 * H]
            o_g = sig[:, 2 * H:3 * H]
            g_g = jnp.tanh(gates[:, 3 * H:4 * H])                  # one EUP launch
            c = f_g * c + i_g * g_g
            h = o_g * jnp.tanh(c)
            hs.append(h)                                           # kept in vregs

        # --- One concatenate, one batched projection, one full-width (128-lane)
        # log_softmax + single unmasked output store. ---
        h_all = jnp.concatenate(hs, axis=0)                        # (T*B, H) f32
        tag = jnp.dot(h_all.astype(mm_dtype), wout_ref[...],
                      preferred_element_type=jnp.float32) + bout_ref[...]   # (T*B, Cp)
        m = jnp.max(tag, axis=-1, keepdims=True)
        lse = m + jnp.log(jnp.sum(jnp.exp(tag - m), axis=-1, keepdims=True))
        out_ref[...] = tag - lse

    return kernel


def _reorder_gates(w):
    """PyTorch LSTM gate order (i,f,g,o) -> (i,f,o,g) along the leading 4H axis."""
    i, f, g, o = jnp.split(w, 4, axis=0)
    return jnp.concatenate([i, f, o, g], axis=0)


def lstm_tagger_forward(sentence, params, *, mm_dtype=jnp.bfloat16):
    """sentence: (B, T) int32 -> (B, T, tagset) f32 log-probs (PyTorch batch_first)."""
    emb, w_ih, w_hh, b_ih, b_hh, w_out, b_out = (
        params["emb"], params["w_ih"], params["w_hh"],
        params["b_ih"], params["b_hh"], params["w_out"], params["b_out"])
    B, T = sentence.shape
    H = w_hh.shape[1]
    C = w_out.shape[0]

    # Pad batch to a multiple of 8 sublanes (aligned slabs; pad rows dropped later).
    B_pad = max(8, ((B + 7) // 8) * 8)
    if B_pad != B:
        pad = jnp.zeros((B_pad - B, T), sentence.dtype)
        sentence_p = jnp.concatenate([sentence, pad], axis=0)
    else:
        sentence_p = sentence

    # glue: layout / parameter plumbing only
    sent_tm = jnp.transpose(sentence_p).reshape(T * B_pad, 1).astype(jnp.int32)

    wih_t = jnp.transpose(_reorder_gates(w_ih))                    # (E, 4H), order i,f,o,g
    # Fold the embedding into W_ih: fused (V, 4H) lookup+projection table.
    emb_wih = jnp.dot(emb, wih_t,
                      precision=jax.lax.Precision.HIGHEST).astype(mm_dtype)
    whh_t = jnp.transpose(_reorder_gates(w_hh)).astype(mm_dtype)   # (H, 4H), order i,f,o,g
    b = _reorder_gates(b_ih + b_hh)[None, :].astype(jnp.float32)   # (1, 4H)

    # Lane-dense output: pad tag dim to 128 lanes.  Zero weight columns and a
    # large-negative (finite) bias in the pad lanes keep log_softmax exact.
    C_pad = max(LANE, ((C + LANE - 1) // LANE) * LANE)
    wout_p = (jnp.zeros((H, C_pad), jnp.float32)
              .at[:, :C].set(jnp.transpose(w_out))).astype(mm_dtype)   # (H, Cp)
    bout_p = (jnp.full((1, C_pad), -1e30, jnp.float32)
              .at[:, :C].set(b_out[None, :]))                          # (1, Cp)

    vmem = pl.BlockSpec(memory_space=pltpu.MemorySpace.VMEM)
    kernel = make_lstm_tagger_kernel(T, B_pad, H, mm_dtype)
    # TODO(synk): for non-toy B, add a batch-tile grid with
    # compiler_params=pltpu.CompilerParams(dimension_semantics=("parallel",))
    # (block sent/out on the batch axis, leave weight refs unblocked) so v7x's
    # two TensorCores split the independent rows and BlockSpec pipelining
    # overlaps the per-tile token fetch with the previous tile's recurrence.
    out_tm = pl.pallas_call(
        kernel,
        out_shape=jax.ShapeDtypeStruct((T * B_pad, C_pad), jnp.float32),
        in_specs=[vmem] * 6,
        out_specs=vmem,
    )(sent_tm, emb_wih, whh_t, b, wout_p, bout_p)

    # back to PyTorch batch_first layout; drop batch and tag-lane padding
    out = jnp.transpose(out_tm.reshape(T, B_pad, C_pad), (1, 0, 2))
    return out[:B, :, :C]


def lstm_tagger_reference(sentence, params):
    """Pure-JAX reference mirroring the PyTorch module."""
    emb, w_ih, w_hh, b_ih, b_hh, w_out, b_out = (
        params["emb"], params["w_ih"], params["w_hh"],
        params["b_ih"], params["b_hh"], params["w_out"], params["b_out"])
    H = w_hh.shape[1]
    embeds = emb[sentence]                              # (B, T, E)
    xs = jnp.transpose(embeds, (1, 0, 2))               # (T, B, E)
    B = sentence.shape[0]

    def step(carry, x_t):
        h, c = carry
        gates = x_t @ w_ih.T + b_ih + h @ w_hh.T + b_hh
        i = jax.nn.sigmoid(gates[:, 0:H])
        f = jax.nn.sigmoid(gates[:, H:2 * H])
        g = jnp.tanh(gates[:, 2 * H:3 * H])
        o = jax.nn.sigmoid(gates[:, 3 * H:4 * H])
        c = f * c + i * g
        h = o * jnp.tanh(c)
        return (h, c), h

    h0 = jnp.zeros((B, H), jnp.float32)
    c0 = jnp.zeros((B, H), jnp.float32)
    _, h_all = lax.scan(step, (h0, c0), xs)             # (T, B, H)
    lstm_out = jnp.transpose(h_all, (1, 0, 2))          # (B, T, H)
    tag_space = lstm_out @ w_out.T + b_out
    return jax.nn.log_softmax(tag_space, axis=-1)


if __name__ == "__main__":
    VOCAB, TAGSET, EMB_DIM, HIDDEN = 16, 8, 32, 32
    B, T = 2, 8

    key = jax.random.PRNGKey(0)
    ks = jax.random.split(key, 8)
    u = lambda k, shape: jax.random.uniform(k, shape, jnp.float32, -0.1, 0.1)
    params = {
        "emb":   u(ks[0], (VOCAB, EMB_DIM)),
        "w_ih":  u(ks[1], (4 * HIDDEN, EMB_DIM)),   # PyTorch weight_ih_l0
        "w_hh":  u(ks[2], (4 * HIDDEN, HIDDEN)),    # PyTorch weight_hh_l0
        "b_ih":  u(ks[3], (4 * HIDDEN,)),
        "b_hh":  u(ks[4], (4 * HIDDEN,)),
        "w_out": u(ks[5], (TAGSET, HIDDEN)),        # hidden2tag weight
        "b_out": u(ks[6], (TAGSET,)),
    }
    sentence = jax.random.randint(ks[7], (B, T), 0, VOCAB, jnp.int32)

    ref = lstm_tagger_reference(sentence, params)

    # f32 MXU mode: tight numerical check of the kernel semantics.
    out_f32 = jax.block_until_ready(
        lstm_tagger_forward(sentence, params, mm_dtype=jnp.float32))
    assert out_f32.shape == (B, T, TAGSET)
    assert jnp.allclose(out_f32, ref, rtol=1e-4, atol=1e-4), "f32 mismatch vs reference"

    # bf16 MXU mode (default; native MXU throughput on v5e/v6e/v7x): loose check.
    out_bf16 = jax.block_until_ready(
        lstm_tagger_forward(sentence, params, mm_dtype=jnp.bfloat16))
    assert out_bf16.shape == (B, T, TAGSET)
    assert jnp.allclose(out_bf16, ref, rtol=5e-2, atol=5e-2), "bf16 mismatch vs reference"

    print("KERNEL_OK")
</pallas_src>

<mosaic_0001>
module attributes {stable_mosaic.version = 11 : i64} {
  func.func @kernel(%arg0: memref<64x1xi32, #tpu.memory_space<vmem>>, %arg1: memref<16x128xf32, #tpu.memory_space<vmem>>, %arg2: memref<32x128xf32, #tpu.memory_space<vmem>>, %arg3: memref<1x128xf32, #tpu.memory_space<vmem>>, %arg4: memref<32x128xf32, #tpu.memory_space<vmem>>, %arg5: memref<1x128xf32, #tpu.memory_space<vmem>>, %arg6: memref<64x128xf32, #tpu.memory_space<vmem>>) attributes {dimension_semantics = [], scalar_prefetch = 0 : i64, scratch_operands = 0 : i64, tpu.core_type = #tpu.core_type<tc>} {
    %c0 = arith.constant 0 : index
    %c0_0 = arith.constant 0 : index
    %0 = vector.load %arg0[%c0, %c0_0] : memref<64x1xi32, #tpu.memory_space<vmem>>, vector<64x1xi32>
    %1 = tpu.iota {dimensions = array<i32: 1>} : vector<64x16xi32>
    %2 = vector.broadcast %0 : vector<64x1xi32> to vector<64x16xi32>
    %3 = arith.cmpi eq, %2, %1 : vector<64x16xi32>
    %4 = arith.extui %3 : vector<64x16xi1> to vector<64x16xi32>
    %5 = arith.sitofp %4 : vector<64x16xi32> to vector<64x16xf32>
    %c0_1 = arith.constant 0 : index
    %c0_2 = arith.constant 0 : index
    %6 = vector.load %arg1[%c0_1, %c0_2] : memref<16x128xf32, #tpu.memory_space<vmem>>, vector<16x128xf32>
    %cst = arith.constant dense<0.000000e+00> : vector<64x128xf32>
    %7 = tpu.matmul %5, %6, %cst {dimension_numbers = #tpu.dot_dimension_numbers<[1], [0], [0], [1], [0, 0, 1, 1], [], []>} : vector<64x16xf32>, vector<16x128xf32>, vector<64x128xf32> -> vector<64x128xf32>
    %c0_3 = arith.constant 0 : index
    %c0_4 = arith.constant 0 : index
    %8 = vector.load %arg3[%c0_3, %c0_4] : memref<1x128xf32, #tpu.memory_space<vmem>>, vector<1x128xf32>
    %9 = vector.broadcast %8 : vector<1x128xf32> to vector<64x128xf32>
    %10 = arith.addf %7, %9 : vector<64x128xf32>
    %c0_5 = arith.constant 0 : index
    %c0_6 = arith.constant 0 : index
    %11 = vector.load %arg2[%c0_5, %c0_6] : memref<32x128xf32, #tpu.memory_space<vmem>>, vector<32x128xf32>
    %cst_7 = arith.constant 0.000000e+00 : f32
    %12 = vector.broadcast %cst_7 : f32 to vector<8x32xf32>
    %cst_8 = arith.constant 0.000000e+00 : f32
    %13 = vector.broadcast %cst_8 : f32 to vector<8x32xf32>
    %14 = vector.extract_strided_slice %10 {offsets = [0, 0], sizes = [8, 128], strides = [1, 1]} : vector<64x128xf32> to vector<8x128xf32>
    %cst_9 = arith.constant dense<0.000000e+00> : vector<8x128xf32>
    %15 = tpu.matmul %12, %11, %cst_9 {dimension_numbers = #tpu.dot_dimension_numbers<[1], [0], [0], [1], [0, 0, 1, 1], [], []>} : vector<8x32xf32>, vector<32x128xf32>, vector<8x128xf32> -> vector<8x128xf32>
    %16 = arith.addf %14, %15 : vector<8x128xf32>
    %17 = vector.extract_strided_slice %16 {offsets = [0, 0], sizes = [8, 96], strides = [1, 1]} : vector<8x128xf32> to vector<8x96xf32>
    %18 = arith.negf %17 : vector<8x96xf32>
    %19 = math.exp %18 : vector<8x96xf32>
    %cst_10 = arith.constant 1.000000e+00 : f32
    %20 = vector.broadcast %cst_10 : f32 to vector<8x96xf32>
    %21 = arith.addf %20, %19 : vector<8x96xf32>
    %22 = arith.divf %20, %21 : vector<8x96xf32>
    %23 = vector.extract_strided_slice %22 {offsets = [0, 0], sizes = [8, 32], strides = [1, 1]} : vector<8x96xf32> to vector<8x32xf32>
    %24 = vector.extract_strided_slice %22 {offsets = [0, 32], sizes = [8, 32], strides = [1, 1]} : vector<8x96xf32> to vector<8x32xf32>
    %25 = vector.extract_strided_slice %22 {offsets = [0, 64], sizes = [8, 32], strides = [1, 1]} : vector<8x96xf32> to vector<8x32xf32>
    %26 = vector.extract_strided_slice %16 {offsets = [0, 96], sizes = [8, 32], strides = [1, 1]} : vector<8x128xf32> to vector<8x32xf32>
    %27 = math.tanh %26 : vector<8x32xf32>
    %28 = arith.mulf %24, %13 : vector<8x32xf32>
    %29 = arith.mulf %23, %27 : vector<8x32xf32>
    %30 = arith.addf %28, %29 : vector<8x32xf32>
    %31 = math.tanh %30 : vector<8x32xf32>
    %32 = arith.mulf %25, %31 : vector<8x32xf32>
    %33 = vector.extract_strided_slice %10 {offsets = [8, 0], sizes = [8, 128], strides = [1, 1]} : vector<64x128xf32> to vector<8x128xf32>
    %cst_11 = arith.constant dense<0.000000e+00> : vector<8x128xf32>
    %34 = tpu.matmul %32, %11, %cst_11 {dimension_numbers = #tpu.dot_dimension_numbers<[1], [0], [0], [1], [0, 0, 1, 1], [], []>} : vector<8x32xf32>, vector<32x128xf32>, vector<8x128xf32> -> vector<8x128xf32>
    %35 = arith.addf %33, %34 : vector<8x128xf32>
    %36 = vector.extract_strided_slice %35 {offsets = [0, 0], sizes = [8, 96], strides = [1, 1]} : vector<8x128xf32> to vector<8x96xf32>
    %37 = arith.negf %36 : vector<8x96xf32>
    %38 = math.exp %37 : vector<8x96xf32>
    %cst_12 = arith.constant 1.000000e+00 : f32
    %39 = vector.broadcast %cst_12 : f32 to vector<8x96xf32>
    %40 = arith.addf %39, %38 : vector<8x96xf32>
    %41 = arith.divf %39, %40 : vector<8x96xf32>
    %42 = vector.extract_strided_slice %41 {offsets = [0, 0], sizes = [8, 32], strides = [1, 1]} : vector<8x96xf32> to vector<8x32xf32>
    %43 = vector.extract_strided_slice %41 {offsets = [0, 32], sizes = [8, 32], strides = [1, 1]} : vector<8x96xf32> to vector<8x32xf32>
    %44 = vector.extract_strided_slice %41 {offsets = [0, 64], sizes = [8, 32], strides = [1, 1]} : vector<8x96xf32> to vector<8x32xf32>
    %45 = vector.extract_strided_slice %35 {offsets = [0, 96], sizes = [8, 32], strides = [1, 1]} : vector<8x128xf32> to vector<8x32xf32>
    %46 = math.tanh %45 : vector<8x32xf32>
    %47 = arith.mulf %43, %30 : vector<8x32xf32>
    %48 = arith.mulf %42, %46 : vector<8x32xf32>
    %49 = arith.addf %47, %48 : vector<8x32xf32>
    %50 = math.tanh %49 : vector<8x32xf32>
    %51 = arith.mulf %44, %50 : vector<8x32xf32>
    %52 = vector.extract_strided_slice %10 {offsets = [16, 0], sizes = [8, 128], strides = [1, 1]} : vector<64x128xf32> to vector<8x128xf32>
    %cst_13 = arith.constant dense<0.000000e+00> : vector<8x128xf32>
    %53 = tpu.matmul %51, %11, %cst_13 {dimension_numbers = #tpu.dot_dimension_numbers<[1], [0], [0], [1], [0, 0, 1, 1], [], []>} : vector<8x32xf32>, vector<32x128xf32>, vector<8x128xf32> -> vector<8x128xf32>
    %54 = arith.addf %52, %53 : vector<8x128xf32>
    %55 = vector.extract_strided_slice %54 {offsets = [0, 0], sizes = [8, 96], strides = [1, 1]} : vector<8x128xf32> to vector<8x96xf32>
    %56 = arith.negf %55 : vector<8x96xf32>
    %57 = math.exp %56 : vector<8x96xf32>
    %cst_14 = arith.constant 1.000000e+00 : f32
    %58 = vector.broadcast %cst_14 : f32 to vector<8x96xf32>
    %59 = arith.addf %58, %57 : vector<8x96xf32>
    %60 = arith.divf %58, %59 : vector<8x96xf32>
    %61 = vector.extract_strided_slice %60 {offsets = [0, 0], sizes = [8, 32], strides = [1, 1]} : vector<8x96xf32> to vector<8x32xf32>
    %62 = vector.extract_strided_slice %60 {offsets = [0, 32], sizes = [8, 32], strides = [1, 1]} : vector<8x96xf32> to vector<8x32xf32>
    %63 = vector.extract_strided_slice %60 {offsets = [0, 64], sizes = [8, 32], strides = [1, 1]} : vector<8x96xf32> to vector<8x32xf32>
    %64 = vector.extract_strided_slice %54 {offsets = [0, 96], sizes = [8, 32], strides = [1, 1]} : vector<8x128xf32> to vector<8x32xf32>
    %65 = math.tanh %64 : vector<8x32xf32>
    %66 = arith.mulf %62, %49 : vector<8x32xf32>
    %67 = arith.mulf %61, %65 : vector<8x32xf32>
    %68 = arith.addf %66, %67 : vector<8x32xf32>
    %69 = math.tanh %68 : vector<8x32xf32>
    %70 = arith.mulf %63, %69 : vector<8x32xf32>
    %71 = vector.extract_strided_slice %10 {offsets = [24, 0], sizes = [8, 128], strides = [1, 1]} : vector<64x128xf32> to vector<8x128xf32>
    %cst_15 = arith.constant dense<0.000000e+00> : vector<8x128xf32>
    %72 = tpu.matmul %70, %11, %cst_15 {dimension_numbers = #tpu.dot_dimension_numbers<[1], [0], [0], [1], [0, 0, 1, 1], [], []>} : vector<8x32xf32>, vector<32x128xf32>, vector<8x128xf32> -> vector<8x128xf32>
    %73 = arith.addf %71, %72 : vector<8x128xf32>
    %74 = vector.extract_strided_slice %73 {offsets = [0, 0], sizes = [8, 96], strides = [1, 1]} : vector<8x128xf32> to vector<8x96xf32>
    %75 = arith.negf %74 : vector<8x96xf32>
    %76 = math.exp %75 : vector<8x96xf32>
    %cst_16 = arith.constant 1.000000e+00 : f32
    %77 = vector.broadcast %cst_16 : f32 to vector<8x96xf32>
    %78 = arith.addf %77, %76 : vector<8x96xf32>
    %79 = arith.divf %77, %78 : vector<8x96xf32>
    %80 = vector.extract_strided_slice %79 {offsets = [0, 0], sizes = [8, 32], strides = [1, 1]} : vector<8x96xf32> to vector<8x32xf32>
    %81 = vector.extract_strided_slice %79 {offsets = [0, 32], sizes = [8, 32], strides = [1, 1]} : vector<8x96xf32> to vector<8x32xf32>
    %82 = vector.extract_strided_slice %79 {offsets = [0, 64], sizes = [8, 32], strides = [1, 1]} : vector<8x96xf32> to vector<8x32xf32>
    %83 = vector.extract_strided_slice %73 {offsets = [0, 96], sizes = [8, 32], strides = [1, 1]} : vector<8x128xf32> to vector<8x32xf32>
    %84 = math.tanh %83 : vector<8x32xf32>
    %85 = arith.mulf %81, %68 : vector<8x32xf32>
    %86 = arith.mulf %80, %84 : vector<8x32xf32>
    %87 = arith.addf %85, %86 : vector<8x32xf32>
    %88 = math.tanh %87 : vector<8x32xf32>
    %89 = arith.mulf %82, %88 : vector<8x32xf32>
    %90 = vector.extract_strided_slice %10 {offsets = [32, 0], sizes = [8, 128], strides = [1, 1]} : vector<64x128xf32> to vector<8x128xf32>
    %cst_17 = arith.constant dense<0.000000e+00> : vector<8x128xf32>
    %91 = tpu.matmul %89, %11, %cst_17 {dimension_numbers = #tpu.dot_dimension_numbers<[1], [0], [0], [1], [0, 0, 1, 1], [], []>} : vector<8x32xf32>, vector<32x128xf32>, vector<8x128xf32> -> vector<8x128xf32>
    %92 = arith.addf %90, %91 : vector<8x128xf32>
    %93 = vector.extract_strided_slice %92 {offsets = [0, 0], sizes = [8, 96], strides = [1, 1]} : vector<8x128xf32> to vector<8x96xf32>
    %94 = arith.negf %93 : vector<8x96xf32>
    %95 = math.exp %94 : vector<8x96xf32>
    %cst_18 = arith.constant 1.000000e+00 : f32
    %96 = vector.broadcast %cst_18 : f32 to vector<8x96xf32>
    %97 = arith.addf %96, %95 : vector<8x96xf32>
    %98 = arith.divf %96, %97 : vector<8x96xf32>
    %99 = vector.extract_strided_slice %98 {offsets = [0, 0], sizes = [8, 32], strides = [1, 1]} : vector<8x96xf32> to vector<8x32xf32>
    %100 = vector.extract_strided_slice %98 {offsets = [0, 32], sizes = [8, 32], strides = [1, 1]} : vector<8x96xf32> to vector<8x32xf32>
    %101 = vector.extract_strided_slice %98 {offsets = [0, 64], sizes = [8, 32], strides = [1, 1]} : vector<8x96xf32> to vector<8x32xf32>
    %102 = vector.extract_strided_slice %92 {offsets = [0, 96], sizes = [8, 32], strides = [1, 1]} : vector<8x128xf32> to vector<8x32xf32>
    %103 = math.tanh %102 : vector<8x32xf32>
    %104 = arith.mulf %100, %87 : vector<8x32xf32>
    %105 = arith.mulf %99, %103 : vector<8x32xf32>
    %106 = arith.addf %104, %105 : vector<8x32xf32>
    %107 = math.tanh %106 : vector<8x32xf32>
    %108 = arith.mulf %101, %107 : vector<8x32xf32>
    %109 = vector.extract_strided_slice %10 {offsets = [40, 0], sizes = [8, 128], strides = [1, 1]} : vector<64x128xf32> to vector<8x128xf32>
    %cst_19 = arith.constant dense<0.000000e+00> : vector<8x128xf32>
    %110 = tpu.matmul %108, %11, %cst_19 {dimension_numbers = #tpu.dot_dimension_numbers<[1], [0], [0], [1], [0, 0, 1, 1], [], []>} : vector<8x32xf32>, vector<32x128xf32>, vector<8x128xf32> -> vector<8x128xf32>
    %111 = arith.addf %109, %110 : vector<8x128xf32>
    %112 = vector.extract_strided_slice %111 {offsets = [0, 0], sizes = [8, 96], strides = [1, 1]} : vector<8x128xf32> to vector<8x96xf32>
    %113 = arith.negf %112 : vector<8x96xf32>
    %114 = math.exp %113 : vector<8x96xf32>
    %cst_20 = arith.constant 1.000000e+00 : f32
    %115 = vector.broadcast %cst_20 : f32 to vector<8x96xf32>
    %116 = arith.addf %115, %114 : vector<8x96xf32>
    %117 = arith.divf %115, %116 : vector<8x96xf32>
    %118 = vector.extract_strided_slice %117 {offsets = [0, 0], sizes = [8, 32], strides = [1, 1]} : vector<8x96xf32> to vector<8x32xf32>
    %119 = vector.extract_strided_slice %117 {offsets = [0, 32], sizes = [8, 32], strides = [1, 1]} : vector<8x96xf32> to vector<8x32xf32>
    %120 = vector.extract_strided_slice %117 {offsets = [0, 64], sizes = [8, 32], strides = [1, 1]} : vector<8x96xf32> to vector<8x32xf32>
    %121 = vector.extract_strided_slice %111 {offsets = [0, 96], sizes = [8, 32], strides = [1, 1]} : vector<8x128xf32> to vector<8x32xf32>
    %122 = math.tanh %121 : vector<8x32xf32>
    %123 = arith.mulf %119, %106 : vector<8x32xf32>
    %124 = arith.mulf %118, %122 : vector<8x32xf32>
    %125 = arith.addf %123, %124 : vector<8x32xf32>
    %126 = math.tanh %125 : vector<8x32xf32>
    %127 = arith.mulf %120, %126 : vector<8x32xf32>
    %128 = vector.extract_strided_slice %10 {offsets = [48, 0], sizes = [8, 128], strides = [1, 1]} : vector<64x128xf32> to vector<8x128xf32>
    %cst_21 = arith.constant dense<0.000000e+00> : vector<8x128xf32>
    %129 = tpu.matmul %127, %11, %cst_21 {dimension_numbers = #tpu.dot_dimension_numbers<[1], [0], [0], [1], [0, 0, 1, 1], [], []>} : vector<8x32xf32>, vector<32x128xf32>, vector<8x128xf32> -> vector<8x128xf32>
    %130 = arith.addf %128, %129 : vector<8x128xf32>
    %131 = vector.extract_strided_slice %130 {offsets = [0, 0], sizes = [8, 96], strides = [1, 1]} : vector<8x128xf32> to vector<8x96xf32>
    %132 = arith.negf %131 : vector<8x96xf32>
    %133 = math.exp %132 : vector<8x96xf32>
    %cst_22 = arith.constant 1.000000e+00 : f32
    %134 = vector.broadcast %cst_22 : f32 to vector<8x96xf32>
    %135 = arith.addf %134, %133 : vector<8x96xf32>
    %136 = arith.divf %134, %135 : vector<8x96xf32>
    %137 = vector.extract_strided_slice %136 {offsets = [0, 0], sizes = [8, 32], strides = [1, 1]} : vector<8x96xf32> to vector<8x32xf32>
    %138 = vector.extract_strided_slice %136 {offsets = [0, 32], sizes = [8, 32], strides = [1, 1]} : vector<8x96xf32> to vector<8x32xf32>
    %139 = vector.extract_strided_slice %136 {offsets = [0, 64], sizes = [8, 32], strides = [1, 1]} : vector<8x96xf32> to vector<8x32xf32>
    %140 = vector.extract_strided_slice %130 {offsets = [0, 96], sizes = [8, 32], strides = [1, 1]} : vector<8x128xf32> to vector<8x32xf32>
    %141 = math.tanh %140 : vector<8x32xf32>
    %142 = arith.mulf %138, %125 : vector<8x32xf32>
    %143 = arith.mulf %137, %141 : vector<8x32xf32>
    %144 = arith.addf %142, %143 : vector<8x32xf32>
    %145 = math.tanh %144 : vector<8x32xf32>
    %146 = arith.mulf %139, %145 : vector<8x32xf32>
    %147 = vector.extract_strided_slice %10 {offsets = [56, 0], sizes = [8, 128], strides = [1, 1]} : vector<64x128xf32> to vector<8x128xf32>
    %cst_23 = arith.constant dense<0.000000e+00> : vector<8x128xf32>
    %148 = tpu.matmul %146, %11, %cst_23 {dimension_numbers = #tpu.dot_dimension_numbers<[1], [0], [0], [1], [0, 0, 1, 1], [], []>} : vector<8x32xf32>, vector<32x128xf32>, vector<8x128xf32> -> vector<8x128xf32>
    %149 = arith.addf %147, %148 : vector<8x128xf32>
    %150 = vector.extract_strided_slice %149 {offsets = [0, 0], sizes = [8, 96], strides = [1, 1]} : vector<8x128xf32> to vector<8x96xf32>
    %151 = arith.negf %150 : vector<8x96xf32>
    %152 = math.exp %151 : vector<8x96xf32>
    %cst_24 = arith.constant 1.000000e+00 : f32
    %153 = vector.broadcast %cst_24 : f32 to vector<8x96xf32>
    %154 = arith.addf %153, %152 : vector<8x96xf32>
    %155 = arith.divf %153, %154 : vector<8x96xf32>
    %156 = vector.extract_strided_slice %155 {offsets = [0, 0], sizes = [8, 32], strides = [1, 1]} : vector<8x96xf32> to vector<8x32xf32>
    %157 = vector.extract_strided_slice %155 {offsets = [0, 32], sizes = [8, 32], strides = [1, 1]} : vector<8x96xf32> to vector<8x32xf32>
    %158 = vector.extract_strided_slice %155 {offsets = [0, 64], sizes = [8, 32], strides = [1, 1]} : vector<8x96xf32> to vector<8x32xf32>
    %159 = vector.extract_strided_slice %149 {offsets = [0, 96], sizes = [8, 32], strides = [1, 1]} : vector<8x128xf32> to vector<8x32xf32>
    %160 = math.tanh %159 : vector<8x32xf32>
    %161 = arith.mulf %157, %144 : vector<8x32xf32>
    %162 = arith.mulf %156, %160 : vector<8x32xf32>
    %163 = arith.addf %161, %162 : vector<8x32xf32>
    %164 = math.tanh %163 : vector<8x32xf32>
    %165 = arith.mulf %158, %164 : vector<8x32xf32>
    %166 = tpu.concatenate %32, %51, %70, %89, %108, %127, %146, %165 in 0 : vector<8x32xf32>, vector<8x32xf32>, vector<8x32xf32>, vector<8x32xf32>, vector<8x32xf32>, vector<8x32xf32>, vector<8x32xf32>, vector<8x32xf32> -> vector<64x32xf32>
    %c0_25 = arith.constant 0 : index
    %c0_26 = arith.constant 0 : index
    %167 = vector.load %arg4[%c0_25, %c0_26] : memref<32x128xf32, #tpu.memory_space<vmem>>, vector<32x128xf32>
    %cst_27 = arith.constant dense<0.000000e+00> : vector<64x128xf32>
    %168 = tpu.matmul %166, %167, %cst_27 {dimension_numbers = #tpu.dot_dimension_numbers<[1], [0], [0], [1], [0, 0, 1, 1], [], []>} : vector<64x32xf32>, vector<32x128xf32>, vector<64x128xf32> -> vector<64x128xf32>
    %c0_28 = arith.constant 0 : index
    %c0_29 = arith.constant 0 : index
    %169 = vector.load %arg5[%c0_28, %c0_29] : memref<1x128xf32, #tpu.memory_space<vmem>>, vector<1x128xf32>
    %170 = vector.broadcast %169 : vector<1x128xf32> to vector<64x128xf32>
    %171 = arith.addf %168, %170 : vector<64x128xf32>
    %cst_30 = arith.constant dense<0xFF800000> : vector<64xf32>
    %172 = vector.multi_reduction <maximumf>, %171, %cst_30 [1] : vector<64x128xf32> to vector<64xf32>
    %173 = vector.shape_cast %172 : vector<64xf32> to vector<64x1xf32>
    %174 = vector.broadcast %173 : vector<64x1xf32> to vector<64x128xf32>
    %175 = arith.subf %171, %174 : vector<64x128xf32>
    %176 = math.exp %175 : vector<64x128xf32>
    %cst_31 = arith.constant dense<0.000000e+00> : vector<64xf32>
    %177 = vector.multi_reduction <add>, %176, %cst_31 [1] : vector<64x128xf32> to vector<64xf32>
    %178 = vector.shape_cast %177 : vector<64xf32> to vector<64x1xf32>
    %179 = math.log %178 : vector<64x1xf32>
    %180 = arith.addf %173, %179 : vector<64x1xf32>
    %181 = vector.broadcast %180 : vector<64x1xf32> to vector<64x128xf32>
    %182 = arith.subf %171, %181 : vector<64x128xf32>
    %c0_32 = arith.constant 0 : index
    %c0_33 = arith.constant 0 : index
    %183 = vector.load %arg6[%c0_32, %c0_33] : memref<64x128xf32, #tpu.memory_space<vmem>>, vector<64x128xf32>
    tpu.vector_store %arg6[%c0_32, %c0_33], %182 {strides = array<i32>} : memref<64x128xf32, #tpu.memory_space<vmem>>, vector<64x128xf32>,
    return
  }
}

</mosaic_0001>

<bundles_post_ra>
// kernel: tpu_custom_call.1
= control target key start
LH: loop header
LB: loop body
LE: loop exit
PB: predicated region body
PF: predicated region fallthrough
CT: control target
= control target key end

     0   :  { %11 = vsyncpa [#allocation3], 0  ;;  %s1347_s0 = inlined_call_operand.vmem [shape: s32[64,1], index: 0, kind: input, shape index: {}]   ;;  %s1348_s1 = inlined_call_operand.hbm [shape: f32[16,128], index: 1, kind: input, shape index: {}]   ;;  %s1349_s2 = inlined_call_operand.vmem [shape: f32[32,128], index: 2, kind: input, shape index: {}]   ;;  %s1350_s3 = inlined_call_operand.vmem [shape: f32[1,128], index: 3, kind: input, shape index: {}]   ;;  %s1351_s4 = inlined_call_operand.vmem [shape: f32[32,128], index: 4, kind: input, shape index: {}]   ;;  %s1352_s5 = inlined_call_operand.vmem [shape: f32[1,128], index: 5, kind: input, shape index: {}]   ;;  %s1353_s6 = inlined_call_operand.hbm [shape: f32[64,128], index: 6, kind: output, shape index: {}]  }
   0x1   :  { %12 = vsyncpa [#allocation4], 0  ;;  %s19_s23 = sshll.u32 %s1348_s1, 4  ;;  %s1051_s24 = smov [#allocation2]   ;;  %s20_s23 = int_to_ptr.hbm [resolvable:$true] %s19_s23 }
   0x2   :  { %s21_s25 = sshll.u32 %s1051_s24, 4  ;;  %s1052_s26 = smov 128   ;;  %s22_s25 = int_to_ptr.vmem [resolvable:$true] %s21_s25 }
   0x3   :  { %s1053_s27 = smov 8  }
   0x4   :  { %27 = dma.hbm_to_vmem [thread:$0]  %s20_s23, 256, %s22_s25, [#allocation3], %s1052_s26, %s1052_s26, %s1053_s27  }
   0x5   :  { %1047 = dma.done.wait [#allocation3], 256  }
   0x6   :  { %1048 = vsyncadd [#allocation3], 4294967040  ;;  %v1054_v0 = vmov 0   ;;  %v47_v1 = vld [vmem:[%s1347_s0 + $0x38] sm:$0xff]  ;;  %v99_v2 = vld [vmem:[#allocation2 + $0x8] sm:$0xff]  ;;  %v48_v10 = vlaneseq  ;;  %vm104_vm0 = vcmask 130048  }
   0x7   :  { %899 = vset.pattern.permute.xlu0 %v1054_v0  ;;  %900 = vset.pattern.permute.xlu2 %v1054_v0  ;;  %v40_v3 = vld [vmem:[%s1347_s0] sm:$0xff]  ;;  %v41_v4 = vld [vmem:[%s1347_s0 + $0x8] sm:$0xff]  ;;  %v1112_v6 = vld [vmem:[%s1349_s2 + $0x18] sm:$0xff]  ;;  %v1055_v13 = vmov 0.0   ;;  %s1056_s18 = smov 32   ;;  %vm174_vm8 = vcmask 261120  }
   0x8   :  { %72 = vperm.xlu0 %899, %v47_v1   ;;  %885 = vmatpush.msra.mxu2 %v99_v2  ;;  %v98_v5 = vld [vmem:[#allocation2] sm:$0xff]  ;;  %v1117_v7 = vld [vmem:[%s1349_s2 + $0x10] sm:$0xff]  ;;  %v1124_v8 = vld [vmem:[%s1349_s2 + $0x8] sm:$0xff]  ;;  %v1149_v11 = vand.u32 127, %v48_v10 }
   0x9   :  { %143 = vmatpush.msra.mxu0 %v99_v2  ;;  %316 = vmatpush.msra.mxu3 %v1112_v6  ;;  %v1135_v9 = vld [vmem:[%s1349_s2] sm:$0xff]  ;;  %s833_s2 = sshll.u32 %s1353_s6, 4  ;;  %s834_s2 = int_to_ptr.hbm [resolvable:$true] %s833_s2 }
   0xa   :  { %886 = vmatpush.msra.mxu2 %v98_v5  ;;  %379 = vmatpush.msra.mxu1 %v1112_v6  ;;  %v1174_v21 = vld [vmem:[%s1350_s3] ss:$0 sm:$0xff]  ;;  %s1057_s3 = smov 64  }
   0xb   :  { %144 = vmatpush.msra.mxu0 %v98_v5  ;;  %317 = vmatpush.msra.mxu3 %v1117_v7 }
   0xc   :  { %190 = vmatpush.msrb.mxu2 %v1112_v6  ;;  %380 = vmatpush.msra.mxu1 %v1117_v7 }
   0xd   :  { %318 = vmatpush.msra.mxu3 %v1124_v8 }
   0xe   :  { %191 = vmatpush.msrb.mxu2 %v1117_v7  ;;  %381 = vmatpush.msra.mxu1 %v1124_v8 }
   0xf   :  { %319 = vmatpush.msra.mxu3 %v1135_v9 }
  0x10   :  { %51 = vperm.xlu0 %899, %v40_v3   ;;  %192 = vmatpush.msrb.mxu2 %v1124_v8 }
  0x11   :  { %382 = vmatpush.msra.mxu1 %v1135_v9  ;;  %505 = vmatpush.msrb.mxu3 %v1112_v6 }
  0x12   :  { %193 = vmatpush.msrb.mxu2 %v1135_v9 }
  0x13   :  { %568 = vmatpush.msrb.mxu1 %v1112_v6  ;;  %506 = vmatpush.msrb.mxu3 %v1117_v7 }
  0x15   :  { %569 = vmatpush.msrb.mxu1 %v1117_v7  ;;  %507 = vmatpush.msrb.mxu3 %v1124_v8 }
  0x17   :  { %570 = vmatpush.msrb.mxu1 %v1124_v8  ;;  %508 = vmatpush.msrb.mxu3 %v1135_v9 }
  0x18   :  { %54 = vperm.xlu0 %899, %v41_v4  }
  0x19   :  { %571 = vmatpush.msrb.mxu1 %v1135_v9 }
  0x7a   :  { %v73_v12 = vpop.permute.xlu0 %72 }
  0x7b   :  { %vm81_vm1 = vcmp.eq.s32.totalorder %v73_v12, %v1149_v11 }
  0x7c   :  { %v853_v14 = vsel %vm81_vm1, 1.0, %v1055_v13 }
  0x7d   :  { %861 = vmatmul.msk.f32.vlgmr.msra.gmra.mxu2 %vm104_vm0, %v853_v14 }
  0x7e   :  { %253 = vmatpush.msra.mxu2 %v1112_v6 }
  0x80   :  { %254 = vmatpush.msra.mxu2 %v1117_v7 }
  0x82   :  { %v52_v15 = vpop.permute.xlu0 %51  ;;  %255 = vmatpush.msra.mxu2 %v1124_v8 }
  0x83   :  { %vm74_vm2 = vcmp.eq.s32.totalorder %v52_v15, %v1149_v11 }
  0x84   :  { %v846_v16 = vsel %vm74_vm2, 1.0, %v1055_v13  ;;  %256 = vmatpush.msra.mxu2 %v1135_v9 }
  0x85   :  { %854 = vmatmul.msk.f32.vlgmr.msra.gmra.mxu0 %vm104_vm0, %v846_v16  ;;  %194 = vmatmul.f32.vlgmr.msrb.gmra.mxu2 %v1055_v13 }
  0x86   :  { %442 = vmatpush.msrb.mxu2 %v1112_v6 }
  0x88   :  { %443 = vmatpush.msrb.mxu2 %v1117_v7 }
  0x8a   :  { %v55_v17 = vpop.permute.xlu0 %54  ;;  %444 = vmatpush.msrb.mxu2 %v1124_v8 }
  0x8b   :  { %vm75_vm3 = vcmp.eq.s32.totalorder %v55_v17, %v1149_v11 }
  0x8c   :  { %v847_v18 = vsel %vm75_vm3, 1.0, %v1055_v13  ;;  %445 = vmatpush.msrb.mxu2 %v1135_v9 }
  0x8d   :  { %855 = vmatmul.msk.f32.gmra.mxu0 %vm104_vm0, %v847_v18 }
 0x100   :  { %v1169_v19 = vpop.f32.mrf.mxu2 }
 0x102   :  { %v146_v20 = vpop.f32.mrf.mxu0 }
 0x103   :  { %v147_v22 = vadd.f32 %v1174_v21, %v146_v20 }
 0x108   :  { %v195_v23 = vpop.f32.mrf.mxu2 }
 0x109   :  { %v198_v24 = vadd.f32 %v195_v23, %v147_v22  ;;  %v43_v23 = vld [vmem:[%s1347_s0 + $0x18] sm:$0xff] }
 0x10a   :  { %v149_v48 = vpop.f32.mrf.mxu0 }
 0x10b   :  { %903 = vtanh.f32 %v198_v24  ;;  %v862_v26 = vmul.f32 -1.442695, %v198_v24  ;;  %v150_v49 = vadd.f32 %v1174_v21, %v149_v48 }
 0x10d   :  { %905 = vpow2.f32 %v862_v26 }
 0x111   :  { %v904_v25 = vpop.eup %903 }
 0x112   :  { %221 = vrot.lane.b32.xlu1 %v904_v25, %s1056_s18 }
 0x113   :  { %v906_v27 = vpop.eup %905 }
 0x114   :  { %v202_v28 = vadd.f32 1.0, %v906_v27 }
 0x116   :  { %907 = vrcp.f32 %v202_v28  ;;  %v214_v34 = vand.u32 2147483648, %v202_v28  ;;  %vm208_vm5 = vweird.f32 %v202_v28  ;;  %v212_v35 = vand.u32 2147483647, %v202_v28 }
 0x118   :  { %v215_v37 = vor.u32 1.1754944e-38, %v214_v34  ;;  %vm213_vm7 = vcmp.eq.f32.partialorder %v212_v35, 8.507059e+37 }
 0x11c   :  { %v908_v29 = vpop.eup %907 }
 0x11d   :  { %v204_v30 = vmul.f32 %v908_v29, %v202_v28  ;;  %vm209_vm4 = vweird.f32 %v908_v29 }
 0x11e   :  { %vm210_vm6 = vmor %vm208_vm5, %vm209_vm4 }
 0x11f   :  { %v205_v31 = vsub.f32 1.0, %v204_v30 }
 0x121   :  { %v206_v32 = vmul.f32 %v908_v29, %v205_v31 }
 0x123   :  { %v207_v33 = vadd.f32 %v908_v29, %v206_v32 }
 0x125   :  { %v211_v36 = vsel %vm210_vm6, %v908_v29, %v207_v33 }
 0x126   :  { %v216_v39 = vsel %vm213_vm7, %v215_v37, %v211_v36 }
 0x127   :  { %v219_v41 = vmul.f32 0.0, %v216_v39 }
 0x184   :  { %v222_v38 = vpop.permute.xlu1 %221 }
 0x185   :  { %v224_v40 = vmul.f32 %v222_v38, %v216_v39 }
 0x187   :  { %226 = vrot.lane.b32.xlu1 %v224_v40, %s1056_s18 }
 0x1f9   :  { %v227_v42 = vpop.permute.xlu1 %226 }
 0x1fa   :  { %v229_v43 = vadd.f32 %v227_v42, %v219_v41 }
 0x1fc   :  { %909 = vtanh.f32 %v229_v43 }
 0x202   :  { %v910_v44 = vpop.eup %909 }
 0x203   :  { %232 = vrot.lane.b32.xlu2 %v910_v44, %s1056_s18 }
 0x25d   :  { %v233_v45 = vpop.permute.xlu2 %232 }
 0x25e   :  { %v235_v46 = vmul.f32 %v233_v45, %v216_v39 }
 0x260   :  { %237 = vrot.lane.b32.xlu2 %v235_v46, %s1057_s3 }
 0x2ba   :  { %v1181_v47 = vpop.permute.xlu2 %237 }
 0x2bb   :  { %863 = vmatmul.msk.f32.vlgmr.msra.gmra.mxu2 %vm174_vm8, %v1181_v47 }
 0x2bc   :  { %631 = vmatpush.msra.mxu2 %v1112_v6 }
 0x2be   :  { %632 = vmatpush.msra.mxu2 %v1117_v7 }
 0x2c0   :  { %633 = vmatpush.msra.mxu2 %v1124_v8  ;;  %v42_v8 = vld [vmem:[%s1347_s0 + $0x10] sm:$0xff] }
 0x2c2   :  { %634 = vmatpush.msra.mxu2 %v1135_v9 }
 0x33e   :  { %v258_v50 = vpop.f32.mrf.mxu2 }
 0x33f   :  { %v261_v51 = vadd.f32 %v258_v50, %v150_v49 }
 0x341   :  { %911 = vtanh.f32 %v261_v51  ;;  %v864_v53 = vmul.f32 -1.442695, %v261_v51 }
 0x343   :  { %913 = vpow2.f32 %v864_v53 }
 0x347   :  { %v912_v52 = vpop.eup %911 }
 0x348   :  { %284 = vrot.lane.b32.xlu1 %v912_v52, %s1056_s18 }
 0x349   :  { %v914_v54 = vpop.eup %913 }
 0x34a   :  { %v265_v55 = vadd.f32 1.0, %v914_v54 }
 0x34c   :  { %915 = vrcp.f32 %v265_v55  ;;  %v277_v61 = vand.u32 2147483648, %v265_v55  ;;  %vm271_vm10 = vweird.f32 %v265_v55  ;;  %v275_v62 = vand.u32 2147483647, %v265_v55 }
 0x34e   :  { %v278_v0 = vor.u32 1.1754944e-38, %v277_v61  ;;  %vm276_vm12 = vcmp.eq.f32.partialorder %v275_v62, 8.507059e+37 }
 0x352   :  { %v916_v56 = vpop.eup %915 }
 0x353   :  { %v267_v57 = vmul.f32 %v916_v56, %v265_v55  ;;  %vm272_vm9 = vweird.f32 %v916_v56 }
 0x354   :  { %vm273_vm11 = vmor %vm271_vm10, %vm272_vm9 }
 0x355   :  { %v268_v58 = vsub.f32 1.0, %v267_v57 }
 0x357   :  { %v269_v59 = vmul.f32 %v916_v56, %v268_v58 }
 0x359   :  { %v270_v60 = vadd.f32 %v916_v56, %v269_v59 }
 0x35b   :  { %v274_v63 = vsel %vm273_vm11, %v916_v56, %v270_v60 }
 0x35c   :  { %v279_v2 = vsel %vm276_vm12, %v278_v0, %v274_v63 }
 0x35d   :  { %v282_v4 = vmul.f32 %v279_v2, %v229_v43 }
 0x3ba   :  { %v285_v1 = vpop.permute.xlu1 %284 }
 0x3bb   :  { %v287_v3 = vmul.f32 %v285_v1, %v279_v2 }
 0x3bd   :  { %289 = vrot.lane.b32.xlu2 %v287_v3, %s1056_s18 }
 0x3c5   :  { %57 = vperm.xlu2 %900, %v42_v8  }
 0x417   :  { %v290_v5 = vpop.permute.xlu2 %289 }
 0x418   :  { %v292_v6 = vadd.f32 %v290_v5, %v282_v4  ;;  %v44_v5 = vld [vmem:[%s1347_s0 + $0x20] sm:$0xff] }
 0x41a   :  { %917 = vtanh.f32 %v292_v6 }
 0x41f   :  { %v58_v12 = vpop.permute.xlu2 %57 }
 0x420   :  { %v918_v7 = vpop.eup %917  ;;  %vm76_vm13 = vcmp.eq.s32.totalorder %v58_v12, %v1149_v11 }
 0x421   :  { %295 = vrot.lane.b32.xlu0 %v918_v7, %s1056_s18  ;;  %v848_v14 = vsel %vm76_vm13, 1.0, %v1055_v13 }
 0x422   :  { %856 = vmatmul.msk.f32.gmra.mxu0 %vm104_vm0, %v848_v14 }
 0x493   :  { %v296_v9 = vpop.permute.xlu0 %295 }
 0x494   :  { %v298_v10 = vmul.f32 %v296_v9, %v279_v2 }
 0x496   :  { %300 = vrot.lane.b32.xlu1 %v298_v10, %s1057_s3 }
 0x49f   :  { %v152_v16 = vpop.f32.mrf.mxu0 }
 0x4a0   :  { %v153_v17 = vadd.f32 %v1174_v21, %v152_v16 }
 0x508   :  { %v1200_v15 = vpop.permute.xlu1 %300 }
 0x509   :  { %865 = vmatmul.msk.f32.vlgmr.msra.gmra.mxu3 %vm174_vm8, %v1200_v15 }
 0x58c   :  { %v321_v18 = vpop.f32.mrf.mxu3 }
 0x58d   :  { %v324_v20 = vadd.f32 %v321_v18, %v153_v17 }
 0x58f   :  { %919 = vtanh.f32 %v324_v20  ;;  %v866_v24 = vmul.f32 -1.442695, %v324_v20 }
 0x591   :  { %921 = vpow2.f32 %v866_v24 }
 0x595   :  { %v920_v22 = vpop.eup %919 }
 0x596   :  { %347 = vrot.lane.b32.xlu0 %v920_v22, %s1056_s18 }
 0x597   :  { %v922_v25 = vpop.eup %921 }
 0x598   :  { %v328_v26 = vadd.f32 1.0, %v922_v25 }
 0x59a   :  { %923 = vrcp.f32 %v328_v26  ;;  %v340_v32 = vand.u32 2147483648, %v328_v26  ;;  %vm334_vm15 = vweird.f32 %v328_v26  ;;  %v338_v33 = vand.u32 2147483647, %v328_v26 }
 0x59c   :  { %v341_v35 = vor.u32 1.1754944e-38, %v340_v32  ;;  %vm339_vm2 = vcmp.eq.f32.partialorder %v338_v33, 8.507059e+37 }
 0x59e   :  { %60 = vperm.xlu0 %899, %v43_v23  }
 0x5a0   :  { %v924_v27 = vpop.eup %923 }
 0x5a1   :  { %v330_v28 = vmul.f32 %v924_v27, %v328_v26  ;;  %vm335_vm14 = vweird.f32 %v924_v27 }
 0x5a2   :  { %vm336_vm1 = vmor %vm334_vm15, %vm335_vm14 }
 0x5a3   :  { %v331_v29 = vsub.f32 1.0, %v330_v28 }
 0x5a5   :  { %v332_v30 = vmul.f32 %v924_v27, %v331_v29 }
 0x5a7   :  { %v333_v31 = vadd.f32 %v924_v27, %v332_v30 }
 0x5a9   :  { %v337_v34 = vsel %vm336_vm1, %v924_v27, %v333_v31 }
 0x5aa   :  { %v342_v37 = vsel %vm339_vm2, %v341_v35, %v337_v34 }
 0x5ab   :  { %v345_v41 = vmul.f32 %v342_v37, %v292_v6 }
 0x608   :  { %v348_v36 = vpop.permute.xlu0 %347 }
 0x609   :  { %v350_v38 = vmul.f32 %v348_v36, %v342_v37 }
 0x60b   :  { %352 = vrot.lane.b32.xlu1 %v350_v38, %s1056_s18 }
 0x610   :  { %v61_v39 = vpop.permute.xlu0 %60 }
 0x611   :  { %vm77_vm3 = vcmp.eq.s32.totalorder %v61_v39, %v1149_v11 }
 0x612   :  { %v849_v40 = vsel %vm77_vm3, 1.0, %v1055_v13 }
 0x613   :  { %857 = vmatmul.msk.f32.gmra.mxu0 %vm104_vm0, %v849_v40  ;;  %v45_v40 = vld [vmem:[%s1347_s0 + $0x28] sm:$0xff] }
 0x67d   :  { %v353_v42 = vpop.permute.xlu1 %352 }
 0x67e   :  { %v355_v43 = vadd.f32 %v353_v42, %v345_v41 }
 0x680   :  { %925 = vtanh.f32 %v355_v43 }
 0x686   :  { %v926_v44 = vpop.eup %925 }
 0x687   :  { %358 = vrot.lane.b32.xlu2 %v926_v44, %s1056_s18 }
 0x690   :  { %v155_v49 = vpop.f32.mrf.mxu0 }
 0x691   :  { %v156_v50 = vadd.f32 %v1174_v21, %v155_v49 }
 0x6e1   :  { %v359_v45 = vpop.permute.xlu2 %358 }
 0x6e2   :  { %v361_v46 = vmul.f32 %v359_v45, %v342_v37 }
 0x6e4   :  { %363 = vrot.lane.b32.xlu1 %v361_v46, %s1057_s3 }
 0x756   :  { %v1215_v48 = vpop.permute.xlu1 %363 }
 0x757   :  { %867 = vmatmul.msk.f32.vlgmr.msra.gmra.mxu1 %vm174_vm8, %v1215_v48 }
 0x7d4   :  { %v384_v51 = vpop.f32.mrf.mxu1 }
 0x7d5   :  { %v387_v52 = vadd.f32 %v384_v51, %v156_v50  ;;  %v680_v51 = vld [vmem:[%s1351_s4 + $0x18] sm:$0xff] }
 0x7d6   :  { %887 = vmatpush.msra.mxu3 %v680_v51  ;;  %702 = vmatpush.msra.mxu1 %v680_v51  ;;  %v168_v51 = vadd.f32 %v1174_v21, %v1169_v19 }
 0x7d7   :  { %927 = vtanh.f32 %v387_v52  ;;  %v868_v54 = vmul.f32 -1.442695, %v387_v52  ;;  %v679_v52 = vld [vmem:[%s1351_s4 + $0x10] sm:$0xff] }
 0x7d8   :  { %888 = vmatpush.msra.mxu3 %v679_v52  ;;  %703 = vmatpush.msra.mxu1 %v679_v52 }
 0x7d9   :  { %929 = vpow2.f32 %v868_v54  ;;  %v677_v54 = vld [vmem:[%s1351_s4] sm:$0xff] }
 0x7dd   :  { %v928_v53 = vpop.eup %927 }
 0x7de   :  { %410 = vrot.lane.b32.xlu2 %v928_v53, %s1056_s18  ;;  %v678_v53 = vld [vmem:[%s1351_s4 + $0x8] sm:$0xff] }
 0x7df   :  { %v930_v55 = vpop.eup %929  ;;  %889 = vmatpush.msra.mxu3 %v678_v53  ;;  %704 = vmatpush.msra.mxu1 %v678_v53 }
 0x7e0   :  { %v391_v56 = vadd.f32 1.0, %v930_v55 }
 0x7e1   :  { %890 = vmatpush.msra.mxu3 %v677_v54  ;;  %705 = vmatpush.msra.mxu1 %v677_v54 }
 0x7e2   :  { %931 = vrcp.f32 %v391_v56  ;;  %v403_v62 = vand.u32 2147483648, %v391_v56  ;;  %vm397_vm5 = vweird.f32 %v391_v56  ;;  %v401_v63 = vand.u32 2147483647, %v391_v56 }
 0x7e4   :  { %v404_v1 = vor.u32 1.1754944e-38, %v403_v62  ;;  %vm402_vm7 = vcmp.eq.f32.partialorder %v401_v63, 8.507059e+37 }
 0x7e8   :  { %v932_v57 = vpop.eup %931 }
 0x7e9   :  { %v393_v58 = vmul.f32 %v932_v57, %v391_v56  ;;  %vm398_vm4 = vweird.f32 %v932_v57 }
 0x7ea   :  { %vm399_vm6 = vmor %vm397_vm5, %vm398_vm4 }
 0x7eb   :  { %v394_v59 = vsub.f32 1.0, %v393_v58 }
 0x7ed   :  { %v395_v60 = vmul.f32 %v932_v57, %v394_v59 }
 0x7ef   :  { %v396_v61 = vadd.f32 %v932_v57, %v395_v60 }
 0x7f1   :  { %v400_v0 = vsel %vm399_vm6, %v932_v57, %v396_v61  ;;  %v46_v61 = vld [vmem:[%s1347_s0 + $0x30] sm:$0xff] }
 0x7f2   :  { %v405_v3 = vsel %vm402_vm7, %v404_v1, %v400_v0 }
 0x7f3   :  { %v408_v6 = vmul.f32 %v405_v3, %v355_v43 }
 0x838   :  { %v411_v2 = vpop.permute.xlu2 %410 }
 0x839   :  { %v413_v4 = vmul.f32 %v411_v2, %v405_v3 }
 0x83b   :  { %415 = vrot.lane.b32.xlu0 %v413_v4, %s1056_s18 }
 0x843   :  { %63 = vperm.xlu0 %899, %v44_v5  }
 0x8ad   :  { %v416_v7 = vpop.permute.xlu0 %415 }
 0x8ae   :  { %v418_v8 = vadd.f32 %v416_v7, %v408_v6 }
 0x8b0   :  { %933 = vtanh.f32 %v418_v8 }
 0x8b5   :  { %v64_v9 = vpop.permute.xlu0 %63 }
 0x8b6   :  { %v934_v10 = vpop.eup %933  ;;  %vm78_vm9 = vcmp.eq.s32.totalorder %v64_v9, %v1149_v11 }
 0x8b7   :  { %v850_v12 = vsel %vm78_vm9, 1.0, %v1055_v13  ;;  %421 = vrot.lane.b32.xlu1 %v934_v10, %s1056_s18 }
 0x8b8   :  { %858 = vmatmul.msk.f32.gmra.mxu0 %vm104_vm0, %v850_v12 }
 0x929   :  { %v422_v14 = vpop.permute.xlu1 %421 }
 0x92a   :  { %v424_v16 = vmul.f32 %v422_v14, %v405_v3 }
 0x92c   :  { %426 = vrot.lane.b32.xlu2 %v424_v16, %s1057_s3 }
 0x935   :  { %v158_v18 = vpop.f32.mrf.mxu0 }
 0x936   :  { %v159_v20 = vadd.f32 %v1174_v21, %v158_v18 }
 0x986   :  { %v1230_v17 = vpop.permute.xlu2 %426 }
 0x987   :  { %869 = vmatmul.msk.f32.vlgmr.msrb.gmra.mxu2 %vm174_vm8, %v1230_v17 }
 0xa0a   :  { %v447_v22 = vpop.f32.mrf.mxu2 }
 0xa0b   :  { %v450_v23 = vadd.f32 %v447_v22, %v159_v20 }
 0xa0d   :  { %935 = vtanh.f32 %v450_v23  ;;  %v870_v25 = vmul.f32 -1.442695, %v450_v23 }
 0xa0f   :  { %937 = vpow2.f32 %v870_v25 }
 0xa13   :  { %v936_v24 = vpop.eup %935 }
 0xa14   :  { %473 = vrot.lane.b32.xlu1 %v936_v24, %s1056_s18 }
 0xa15   :  { %v938_v26 = vpop.eup %937 }
 0xa16   :  { %v454_v27 = vadd.f32 1.0, %v938_v26 }
 0xa18   :  { %939 = vrcp.f32 %v454_v27  ;;  %v466_v33 = vand.u32 2147483648, %v454_v27  ;;  %vm460_vm11 = vweird.f32 %v454_v27  ;;  %v464_v34 = vand.u32 2147483647, %v454_v27 }
 0xa1a   :  { %v467_v36 = vor.u32 1.1754944e-38, %v466_v33  ;;  %vm465_vm13 = vcmp.eq.f32.partialorder %v464_v34, 8.507059e+37 }
 0xa1e   :  { %v940_v28 = vpop.eup %939 }
 0xa1f   :  { %v456_v29 = vmul.f32 %v940_v28, %v454_v27  ;;  %vm461_vm10 = vweird.f32 %v940_v28 }
 0xa20   :  { %vm462_vm12 = vmor %vm460_vm11, %vm461_vm10 }
 0xa21   :  { %v457_v30 = vsub.f32 1.0, %v456_v29 }
 0xa23   :  { %v458_v31 = vmul.f32 %v940_v28, %v457_v30 }
 0xa25   :  { %v459_v32 = vadd.f32 %v940_v28, %v458_v31 }
 0xa27   :  { %v463_v35 = vsel %vm462_vm12, %v940_v28, %v459_v32 }
 0xa28   :  { %v468_v38 = vsel %vm465_vm13, %v467_v36, %v463_v35 }
 0xa29   :  { %v471_v41 = vmul.f32 %v468_v38, %v418_v8 }
 0xa86   :  { %v474_v37 = vpop.permute.xlu1 %473 }
 0xa87   :  { %v476_v39 = vmul.f32 %v474_v37, %v468_v38 }
 0xa89   :  { %478 = vrot.lane.b32.xlu2 %v476_v39, %s1056_s18 }
 0xa91   :  { %66 = vperm.xlu2 %900, %v45_v40  }
 0xae3   :  { %v479_v42 = vpop.permute.xlu2 %478 }
 0xae4   :  { %v481_v43 = vadd.f32 %v479_v42, %v471_v41 }
 0xae6   :  { %941 = vtanh.f32 %v481_v43 }
 0xaeb   :  { %v67_v44 = vpop.permute.xlu2 %66 }
 0xaec   :  { %v942_v45 = vpop.eup %941  ;;  %vm79_vm14 = vcmp.eq.s32.totalorder %v67_v44, %v1149_v11 }
 0xaed   :  { %v851_v46 = vsel %vm79_vm14, 1.0, %v1055_v13  ;;  %484 = vrot.lane.b32.xlu0 %v942_v45, %s1056_s18 }
 0xaee   :  { %859 = vmatmul.msk.f32.gmra.mxu0 %vm104_vm0, %v851_v46 }
 0xb5f   :  { %v485_v49 = vpop.permute.xlu0 %484 }
 0xb60   :  { %v487_v50 = vmul.f32 %v485_v49, %v468_v38 }
 0xb62   :  { %489 = vrot.lane.b32.xlu1 %v487_v50, %s1057_s3 }
 0xb6b   :  { %v161_v56 = vpop.f32.mrf.mxu0 }
 0xb6c   :  { %v162_v57 = vadd.f32 %v1174_v21, %v161_v56 }
 0xbd4   :  { %v490_v55 = vpop.permute.xlu1 %489 }
 0xbd5   :  { %871 = vmatmul.msk.f32.vlgmr.msrb.gmra.mxu3 %vm174_vm8, %v490_v55 }
 0xbdd   :  { %881 = vmatmul.msk.f32.vlgmr.msra.gmra.mxu3 %vm174_vm8, %v490_v55 }
 0xc58   :  { %v510_v58 = vpop.f32.mrf.mxu3 }
 0xc59   :  { %v513_v59 = vadd.f32 %v510_v58, %v162_v57 }
 0xc5b   :  { %943 = vtanh.f32 %v513_v59  ;;  %v872_v62 = vmul.f32 -1.442695, %v513_v59 }
 0xc5d   :  { %945 = vpow2.f32 %v872_v62 }
 0xc61   :  { %v944_v60 = vpop.eup %943 }
 0xc62   :  { %536 = vrot.lane.b32.xlu0 %v944_v60, %s1056_s18 }
 0xc63   :  { %v946_v63 = vpop.eup %945 }
 0xc64   :  { %v517_v0 = vadd.f32 1.0, %v946_v63 }
 0xc66   :  { %947 = vrcp.f32 %v517_v0  ;;  %v529_v6 = vand.u32 2147483648, %v517_v0  ;;  %vm523_vm1 = vweird.f32 %v517_v0  ;;  %v527_v7 = vand.u32 2147483647, %v517_v0 }
 0xc68   :  { %v530_v9 = vor.u32 1.1754944e-38, %v529_v6  ;;  %vm528_vm3 = vcmp.eq.f32.partialorder %v527_v7, 8.507059e+37  ;;  %v719_v7 = vpop.f32.mrf.mxu3 }
 0xc6a   :  { %69 = vperm.xlu0 %899, %v46_v61  }
 0xc6c   :  { %v948_v1 = vpop.eup %947 }
 0xc6d   :  { %v519_v2 = vmul.f32 %v948_v1, %v517_v0  ;;  %vm524_vm15 = vweird.f32 %v948_v1 }
 0xc6e   :  { %vm525_vm2 = vmor %vm523_vm1, %vm524_vm15 }
 0xc6f   :  { %v520_v3 = vsub.f32 1.0, %v519_v2 }
 0xc71   :  { %v521_v4 = vmul.f32 %v948_v1, %v520_v3 }
 0xc73   :  { %v522_v5 = vadd.f32 %v948_v1, %v521_v4 }
 0xc75   :  { %v526_v8 = vsel %vm525_vm2, %v948_v1, %v522_v5  ;;  %v1294_v5 = vld [vmem:[%s1352_s5] ss:$0 sm:$0xff]  ;;  %s1058_s5 = smov [#allocation5]  }
 0xc76   :  { %v531_v12 = vsel %vm528_vm3, %v530_v9, %v526_v8  ;;  %v1298_v8 = vadd.f32 %v1294_v5, %v719_v7  ;;  %s831_s14 = sshll.u32 %s1058_s5, 4  ;;  %s832_s14 = int_to_ptr.vmem [resolvable:$true] %s831_s14 }
 0xc77   :  { %v534_v20 = vmul.f32 %v531_v12, %v481_v43 }
 0xcd4   :  { %v537_v10 = vpop.permute.xlu0 %536 }
 0xcd5   :  { %v539_v14 = vmul.f32 %v537_v10, %v531_v12 }
 0xcd7   :  { %541 = vrot.lane.b32.xlu1 %v539_v14, %s1056_s18 }
 0xcdc   :  { %v70_v16 = vpop.permute.xlu0 %69 }
 0xcdd   :  { %vm80_vm4 = vcmp.eq.s32.totalorder %v70_v16, %v1149_v11 }
 0xcde   :  { %v852_v18 = vsel %vm80_vm4, 1.0, %v1055_v13 }
 0xcdf   :  { %860 = vmatmul.msk.f32.gmra.mxu0 %vm104_vm0, %v852_v18 }
 0xd49   :  { %v542_v22 = vpop.permute.xlu1 %541 }
 0xd4a   :  { %v544_v23 = vadd.f32 %v542_v22, %v534_v20 }
 0xd4c   :  { %949 = vtanh.f32 %v544_v23 }
 0xd52   :  { %v950_v24 = vpop.eup %949 }
 0xd53   :  { %547 = vrot.lane.b32.xlu2 %v950_v24, %s1056_s18 }
 0xd5c   :  { %v164_v11 = vpop.f32.mrf.mxu0 }
 0xd5d   :  { %v165_v13 = vadd.f32 %v1174_v21, %v164_v11 }
 0xdad   :  { %v548_v25 = vpop.permute.xlu2 %547 }
 0xdae   :  { %v550_v26 = vmul.f32 %v548_v25, %v531_v12 }
 0xdb0   :  { %552 = vrot.lane.b32.xlu1 %v550_v26, %s1057_s3 }
 0xe22   :  { %v553_v27 = vpop.permute.xlu1 %552 }
 0xe23   :  { %873 = vmatmul.msk.f32.vlgmr.msrb.gmra.mxu1 %vm174_vm8, %v553_v27  ;;  %882 = vmatmul.msk.f32.gmra.mxu3 %vm174_vm8, %v553_v27 }
 0xe2b   :  { %877 = vmatmul.msk.f32.vlgmr.msra.gmra.mxu1 %vm174_vm8, %v1181_v47 }
 0xe33   :  { %878 = vmatmul.msk.f32.gmra.mxu1 %vm174_vm8, %v1200_v15 }
 0xe3b   :  { %879 = vmatmul.msk.f32.gmra.mxu1 %vm174_vm8, %v1215_v48 }
 0xe43   :  { %880 = vmatmul.msk.f32.gmra.mxu1 %vm174_vm8, %v1230_v17 }
 0xea0   :  { %v573_v28 = vpop.f32.mrf.mxu1 }
 0xea1   :  { %v576_v29 = vadd.f32 %v573_v28, %v165_v13 }
 0xea3   :  { %951 = vtanh.f32 %v576_v29  ;;  %v874_v31 = vmul.f32 -1.442695, %v576_v29 }
 0xea5   :  { %953 = vpow2.f32 %v874_v31 }
 0xea6   :  { %v722_v26 = vpop.f32.mrf.mxu3 }
 0xea7   :  { %v1311_v11 = vadd.f32 %v1294_v5, %v722_v26 }
 0xea8   :  { %v707_v4 = vpop.f32.mrf.mxu1 }
 0xea9   :  { %v952_v30 = vpop.eup %951  ;;  %v708_v6 = vadd.f32 %v1294_v5, %v707_v4 }
 0xeaa   :  { %599 = vrot.lane.b32.xlu2 %v952_v30, %s1056_s18 }
 0xeab   :  { %v954_v47 = vpop.eup %953 }
 0xeac   :  { %v580_v32 = vadd.f32 1.0, %v954_v47 }
 0xeae   :  { %955 = vrcp.f32 %v580_v32  ;;  %v592_v17 = vand.u32 2147483648, %v580_v32  ;;  %vm586_vm5 = vweird.f32 %v580_v32  ;;  %v590_v36 = vand.u32 2147483647, %v580_v32 }
 0xeb0   :  { %v593_v38 = vor.u32 1.1754944e-38, %v592_v17  ;;  %vm591_vm7 = vcmp.eq.f32.partialorder %v590_v36, 8.507059e+37  ;;  %v710_v16 = vpop.f32.mrf.mxu1 }
 0xeb1   :  { %v1303_v20 = vadd.f32 %v1294_v5, %v710_v16 }
 0xeb4   :  { %v956_v15 = vpop.eup %955 }
 0xeb5   :  { %v582_v33 = vmul.f32 %v956_v15, %v580_v32  ;;  %vm587_vm0 = vweird.f32 %v956_v15 }
 0xeb6   :  { %vm588_vm6 = vmor %vm586_vm5, %vm587_vm0 }
 0xeb7   :  { %v583_v48 = vsub.f32 1.0, %v582_v33 }
 0xeb8   :  { %v713_v18 = vpop.f32.mrf.mxu1 }
 0xeb9   :  { %v584_v34 = vmul.f32 %v956_v15, %v583_v48  ;;  %v1316_v30 = vadd.f32 %v1294_v5, %v713_v18 }
 0xebb   :  { %v585_v35 = vadd.f32 %v956_v15, %v584_v34 }
 0xebd   :  { %v589_v37 = vsel %vm588_vm6, %v956_v15, %v585_v35 }
 0xebe   :  { %v594_v40 = vsel %vm591_vm7, %v593_v38, %v589_v37 }
 0xebf   :  { %v597_v42 = vmul.f32 %v594_v40, %v544_v23 }
 0xec0   :  { %v716_v22 = vpop.f32.mrf.mxu1 }
 0xec1   :  { %v1307_v23 = vadd.f32 %v1294_v5, %v716_v22 }
 0xf04   :  { %v600_v39 = vpop.permute.xlu2 %599 }
 0xf05   :  { %v602_v41 = vmul.f32 %v600_v39, %v594_v40 }
 0xf07   :  { %604 = vrot.lane.b32.xlu0 %v602_v41, %s1056_s18 }
 0xf79   :  { %v605_v43 = vpop.permute.xlu0 %604 }
 0xf7a   :  { %v607_v44 = vadd.f32 %v605_v43, %v597_v42 }
 0xf7c   :  { %957 = vtanh.f32 %v607_v44 }
 0xf82   :  { %v958_v45 = vpop.eup %957 }
 0xf83   :  { %610 = vrot.lane.b32.xlu1 %v958_v45, %s1056_s18 }
 0xff5   :  { %v611_v46 = vpop.permute.xlu1 %610 }
 0xff6   :  { %v613_v49 = vmul.f32 %v611_v46, %v594_v40 }
 0xff8   :  { %615 = vrot.lane.b32.xlu2 %v613_v49, %s1057_s3 }
0x1052   :  { %v616_v50 = vpop.permute.xlu2 %615 }
0x1053   :  { %875 = vmatmul.msk.f32.vlgmr.msra.gmra.mxu2 %vm174_vm8, %v616_v50  ;;  %883 = vmatmul.msk.f32.gmra.mxu3 %vm174_vm8, %v616_v50 }
0x10d6   :  { %v636_v52 = vpop.f32.mrf.mxu2  ;;  %v725_v31 = vpop.f32.mrf.mxu3 }
0x10d7   :  { %v639_v53 = vadd.f32 %v636_v52, %v168_v51  ;;  %v1320_v47 = vadd.f32 %v1294_v5, %v725_v31 }
0x10d9   :  { %959 = vtanh.f32 %v639_v53  ;;  %v876_v55 = vmul.f32 -1.442695, %v639_v53 }
0x10db   :  { %961 = vpow2.f32 %v876_v55 }
0x10df   :  { %v960_v54 = vpop.eup %959 }
0x10e0   :  { %662 = vrot.lane.b32.xlu0 %v960_v54, %s1056_s18 }
0x10e1   :  { %v962_v56 = vpop.eup %961 }
0x10e2   :  { %v643_v57 = vadd.f32 1.0, %v962_v56 }
0x10e4   :  { %963 = vrcp.f32 %v643_v57  ;;  %v655_v63 = vand.u32 2147483648, %v643_v57  ;;  %vm649_vm10 = vweird.f32 %v643_v57  ;;  %v653_v19 = vand.u32 2147483647, %v643_v57 }
0x10e6   :  { %v656_v0 = vor.u32 1.1754944e-38, %v655_v63  ;;  %vm654_vm12 = vcmp.eq.f32.partialorder %v653_v19, 8.507059e+37 }
0x10ea   :  { %v964_v58 = vpop.eup %963 }
0x10eb   :  { %v645_v59 = vmul.f32 %v964_v58, %v643_v57  ;;  %vm650_vm9 = vweird.f32 %v964_v58 }
0x10ec   :  { %vm651_vm11 = vmor %vm649_vm10, %vm650_vm9 }
0x10ed   :  { %v646_v60 = vsub.f32 1.0, %v645_v59 }
0x10ef   :  { %v647_v61 = vmul.f32 %v964_v58, %v646_v60 }
0x10f1   :  { %v648_v62 = vadd.f32 %v964_v58, %v647_v61 }
0x10f3   :  { %v652_v21 = vsel %vm651_vm11, %v964_v58, %v648_v62 }
0x10f4   :  { %v657_v2 = vsel %vm654_vm12, %v656_v0, %v652_v21 }
0x10f5   :  { %v660_v9 = vmul.f32 %v657_v2, %v607_v44 }
0x1152   :  { %v663_v1 = vpop.permute.xlu0 %662 }
0x1153   :  { %v665_v3 = vmul.f32 %v663_v1, %v657_v2 }
0x1155   :  { %667 = vrot.lane.b32.xlu1 %v665_v3, %s1056_s18 }
0x117f   :  { %731 = vmax.xlane.f32.xlu1 %v708_v6 }
0x1187   :  { %739 = vmax.xlane.f32.xlu1 %v1298_v8 }
0x11c7   :  { %v668_v10 = vpop.permute.xlu1 %667 }
0x11c8   :  { %v670_v12 = vadd.f32 %v668_v10, %v660_v9 }
0x11ca   :  { %965 = vtanh.f32 %v670_v12 }
0x11d0   :  { %v966_v14 = vpop.eup %965 }
0x11d1   :  { %673 = vrot.lane.b32.xlu2 %v966_v14, %s1056_s18 }
0x11f2   :  { %v732_v24 = vpop.xlane.xlu1 %731 }
0x11f3   :  { %v747_v25 = vsub.f32 %v708_v6, %v732_v24 }
0x11f5   :  { %v755_v27 = vmul.f32 1.442695, %v747_v25 }
0x11f7   :  { %967 = vpow2.f32 %v755_v27 }
0x11fa   :  { %733 = vmax.xlane.f32.xlu2 %v1303_v20  ;;  %v740_v15 = vpop.xlane.xlu1 %739 }
0x11fb   :  { %v751_v34 = vsub.f32 %v1298_v8, %v740_v15 }
0x11fd   :  { %v968_v13 = vpop.eup %967  ;;  %v763_v35 = vmul.f32 1.442695, %v751_v34 }
0x1202   :  { %737 = vmax.xlane.f32.xlu2 %v1307_v23 }
0x120a   :  { %741 = vmax.xlane.f32.xlu2 %v1311_v11 }
0x1212   :  { %771 = vadd.xlane.f32.xlu2 %v968_v13 }
0x122b   :  { %v674_v28 = vpop.permute.xlu2 %673 }
0x122c   :  { %v676_v29 = vmul.f32 %v674_v28, %v657_v2 }
0x122e   :  { %686 = vrot.lane.b32.xlu0 %v676_v29, %s1057_s3 }
0x1258   :  { %735 = vmax.xlane.f32.xlu0 %v1316_v30 }
0x1260   :  { %743 = vmax.xlane.f32.xlu0 %v1320_v47 }
0x126d   :  { %v734_v32 = vpop.xlane.xlu2 %733 }
0x126e   :  { %v748_v33 = vsub.f32 %v1303_v20, %v734_v32 }
0x1270   :  { %v757_v48 = vmul.f32 1.442695, %v748_v33 }
0x1272   :  { %969 = vpow2.f32 %v757_v48 }
0x1273   :  { %971 = vpow2.f32 %v763_v35 }
0x1275   :  { %v738_v17 = vpop.xlane.xlu2 %737 }
0x1276   :  { %v750_v36 = vsub.f32 %v1307_v23, %v738_v17 }
0x1278   :  { %v970_v37 = vpop.eup %969  ;;  %v761_v38 = vmul.f32 1.442695, %v750_v36 }
0x1279   :  { %773 = vadd.xlane.f32.xlu0 %v970_v37  ;;  %v972_v40 = vpop.eup %971 }
0x127a   :  { %973 = vpow2.f32 %v761_v38 }
0x127d   :  { %v1326_v39 = vpop.xlane.xlu2 %741 }
0x127e   :  { %v752_v10 = vsub.f32 %v1311_v11, %v1326_v39 }
0x1280   :  { %v974_v41 = vpop.eup %973  ;;  %v765_v12 = vmul.f32 1.442695, %v752_v10 }
0x1281   :  { %779 = vadd.xlane.f32.xlu0 %v972_v40  ;;  %777 = vadd.xlane.f32.xlu2 %v974_v41 }
0x1285   :  { %v772_v42 = vpop.xlane.xlu2 %771 }
0x1286   :  { %975 = vlog2.f32 %v772_v42 }
0x128c   :  { %v976_v43 = vpop.eup %975 }
0x128d   :  { %v788_v44 = vmul.f32 0.6931472, %v976_v43 }
0x128f   :  { %v803_v45 = vadd.f32 %v788_v44, %v732_v24 }
0x1291   :  { %v811_v46 = vsub.f32 %v708_v6, %v803_v45 }
0x1293   :  { %819 = vst [vmem:[#allocation5] sm:$0xff] %v811_v46 }
0x12a0   :  { %v687_v49 = vpop.permute.xlu0 %686 }
0x12a1   :  { %884 = vmatmul.msk.f32.gmra.mxu3 %vm174_vm8, %v687_v49 }
0x12cb   :  { %v736_v50 = vpop.xlane.xlu0 %735 }
0x12cc   :  { %v749_v4 = vsub.f32 %v1316_v30, %v736_v50 }
0x12ce   :  { %v759_v6 = vmul.f32 1.442695, %v749_v4 }
0x12d3   :  { %v744_v51 = vpop.xlane.xlu0 %743 }
0x12d4   :  { %v753_v52 = vsub.f32 %v1320_v47, %v744_v51 }
0x12d6   :  { %v767_v53 = vmul.f32 1.442695, %v753_v52 }
0x12d8   :  { %977 = vpow2.f32 %v767_v53 }
0x12de   :  { %v978_v54 = vpop.eup %977 }
0x12df   :  { %783 = vadd.xlane.f32.xlu2 %v978_v54 }
0x12ec   :  { %v774_v55 = vpop.xlane.xlu0 %773 }
0x12ed   :  { %979 = vlog2.f32 %v774_v55 }
0x12f3   :  { %v980_v56 = vpop.eup %979 }
0x12f4   :  { %v790_v57 = vmul.f32 0.6931472, %v980_v56  ;;  %v780_v58 = vpop.xlane.xlu0 %779  ;;  %v778_v59 = vpop.xlane.xlu2 %777 }
0x12f5   :  { %981 = vlog2.f32 %v780_v58 }
0x12f6   :  { %v804_v60 = vadd.f32 %v790_v57, %v734_v32  ;;  %983 = vlog2.f32 %v778_v59 }
0x12f7   :  { %985 = vpow2.f32 %v759_v6 }
0x12f8   :  { %v812_v61 = vsub.f32 %v1303_v20, %v804_v60  ;;  %987 = vpow2.f32 %v765_v12 }
0x12fa   :  { %820 = vst [vmem:[#allocation5 + $0x8] sm:$0xff] %v812_v61 }
0x12fb   :  { %v982_v62 = vpop.eup %981 }
0x12fc   :  { %v984_v63 = vpop.eup %983  ;;  %v796_v19 = vmul.f32 0.6931472, %v982_v62 }
0x12fd   :  { %v794_v21 = vmul.f32 0.6931472, %v984_v63  ;;  %v986_v14 = vpop.eup %985 }
0x12fe   :  { %v807_v0 = vadd.f32 %v796_v19, %v740_v15 }
0x12ff   :  { %v806_v1 = vadd.f32 %v794_v21, %v738_v17 }
0x1300   :  { %v815_v2 = vsub.f32 %v1298_v8, %v807_v0  ;;  %v988_v8 = vpop.eup %987 }
0x1301   :  { %v814_v3 = vsub.f32 %v1307_v23, %v806_v1 }
0x1302   :  { %823 = vst [vmem:[#allocation5 + $0x20] sm:$0xff] %v815_v2 }
0x1303   :  { %822 = vst [vmem:[#allocation5 + $0x18] sm:$0xff] %v814_v3 }
0x1324   :  { %v728_v7 = vpop.f32.mrf.mxu3 }
0x1325   :  { %v729_v9 = vadd.f32 %v1294_v5, %v728_v7 }
0x1327   :  { %745 = vmax.xlane.f32.xlu1 %v729_v9 }
0x132f   :  { %775 = vadd.xlane.f32.xlu1 %v986_v14 }
0x1337   :  { %781 = vadd.xlane.f32.xlu1 %v988_v8 }
0x1352   :  { %v784_v16 = vpop.xlane.xlu2 %783 }
0x1353   :  { %989 = vlog2.f32 %v784_v16 }
0x1359   :  { %v990_v18 = vpop.eup %989 }
0x135a   :  { %v800_v20 = vmul.f32 0.6931472, %v990_v18 }
0x135c   :  { %v809_v22 = vadd.f32 %v800_v20, %v744_v51 }
0x135e   :  { %v817_v23 = vsub.f32 %v1320_v47, %v809_v22 }
0x1360   :  { %825 = vst [vmem:[#allocation5 + $0x30] sm:$0xff] %v817_v23 }
0x139a   :  { %v746_v5 = vpop.xlane.xlu1 %745 }
0x139b   :  { %v754_v24 = vsub.f32 %v729_v9, %v746_v5 }
0x139d   :  { %v769_v25 = vmul.f32 1.442695, %v754_v24 }
0x139f   :  { %991 = vpow2.f32 %v769_v25 }
0x13a2   :  { %v776_v26 = vpop.xlane.xlu1 %775 }
0x13a3   :  { %993 = vlog2.f32 %v776_v26 }
0x13a5   :  { %v992_v27 = vpop.eup %991 }
0x13a6   :  { %785 = vadd.xlane.f32.xlu0 %v992_v27 }
0x13a9   :  { %v994_v13 = vpop.eup %993 }
0x13aa   :  { %v792_v28 = vmul.f32 0.6931472, %v994_v13  ;;  %v782_v29 = vpop.xlane.xlu1 %781 }
0x13ab   :  { %995 = vlog2.f32 %v782_v29 }
0x13ac   :  { %v805_v31 = vadd.f32 %v792_v28, %v736_v50 }
0x13ae   :  { %v813_v32 = vsub.f32 %v1316_v30, %v805_v31 }
0x13b0   :  { %821 = vst [vmem:[#allocation5 + $0x10] sm:$0xff] %v813_v32 }
0x13b1   :  { %v996_v15 = vpop.eup %995 }
0x13b2   :  { %v798_v33 = vmul.f32 0.6931472, %v996_v15 }
0x13b4   :  { %v808_v47 = vadd.f32 %v798_v33, %v1326_v39 }
0x13b6   :  { %v816_v48 = vsub.f32 %v1311_v11, %v808_v47 }
0x13b8   :  { %824 = vst [vmem:[#allocation5 + $0x28] sm:$0xff] %v816_v48 }
0x1419   :  { %v786_v34 = vpop.xlane.xlu0 %785 }
0x141a   :  { %997 = vlog2.f32 %v786_v34 }
0x1420   :  { %v998_v35 = vpop.eup %997 }
0x1421   :  { %v802_v17 = vmul.f32 0.6931472, %v998_v35 }
0x1423   :  { %v810_v36 = vadd.f32 %v802_v17, %v746_v5 }
0x1425   :  { %v818_v30 = vsub.f32 %v729_v9, %v810_v36 }
0x1427   :  { %826 = vst [vmem:[#allocation5 + $0x38] sm:$0xff] %v818_v30 }
0x1428   :  { %839 = dma.vmem_to_hbm [thread:$0]  %s832_s14, 1024, %s834_s2, [#allocation4], %s1052_s26, %s1052_s26, %s1053_s27  }
0x1429   :  { %1049 = dma.done.wait [#allocation4], 1024  }
0x142a   :  { %1050 = vsyncadd [#allocation4], 4294966272 }
0x142b   :  { %844 = vsyncpa [#allocation3], 1 }
0x142c   :  { %845 = vsyncpa [#allocation4], 1 }

</bundles_post_ra>
